<compile_context>
chip_gen: v6e
topology: v6e:2x2x1
jax: 0.10.0
libtpu: 0.0.40
codegen_flags: <defaults>
</compile_context>

<pallas_src>
import functools

import jax
import jax.numpy as jnp
from jax.experimental import pallas as pl
from jax.experimental.pallas import tpu as pltpu

LOG_SIGMA_MAX = 2.0
LOG_SIGMA_MIN = -20.0

_LANE = 128
_SINGLE_STEP_CAP = 512  # rows handled in one grid step before tiling kicks in


def _round_up(x, m):
    return (x + m - 1) // m * m


def _mxu_batch_tile():
    """MXU-matched batch tile for large B: 256 on v6e/v7x, 128 on v4/v5."""
    try:
        kind = jax.devices()[0].device_kind.lower()
    except Exception:
        return 256
    if "v5" in kind or "v4" in kind:
        return 128
    return 256


def _actor_kernel(n_actions, x_ref, w1_ref, b1_ref, w2_ref, b2_ref,
                  wh_ref, bh_ref, out_ref):
    # x: (TB, D) f32; weights bf16; biases f32; MXU accumulates in f32.
    x = x_ref[...].astype(jnp.bfloat16)

    h1 = jnp.dot(x, w1_ref[...], preferred_element_type=jnp.float32) + b1_ref[...]
    h1 = jnp.maximum(h1, 0.0)

    h2 = jnp.dot(h1.astype(jnp.bfloat16), w2_ref[...],
                 preferred_element_type=jnp.float32) + b2_ref[...]
    h2 = jnp.maximum(h2, 0.0)

    # Fused, lane-padded head: cols [0, n) = mu, [n, 2n) = log_sigma,
    # [2n, 128) = zero padding (weights/bias zero -> exp(clip(0)) = 1).
    head = jnp.dot(h2.astype(jnp.bfloat16), wh_ref[...],
                   preferred_element_type=jnp.float32) + bh_ref[...]

    # sigma = exp(clip(log_sigma)); mu columns pass through via a lane mask
    # (whole-vreg EUP exp + select is cheaper than 1-lane slices + concat).
    sig_all = jnp.exp(jnp.clip(head, LOG_SIGMA_MIN, LOG_SIGMA_MAX))
    col = jax.lax.broadcasted_iota(jnp.int32, head.shape, 1)
    out_ref[...] = jnp.where(col >= n_actions, sig_all, head).astype(out_ref.dtype)


def prepare_params(params_f32):
    """Pack f32 (transposed-PyTorch-layout) params: fused lane-padded head, bf16 weights."""
    n_actions = params_f32["wmu"].shape[1]
    fc2 = params_f32["wmu"].shape[0]
    head = max(_LANE, _round_up(2 * n_actions, _LANE))

    wh = jnp.zeros((fc2, head), jnp.float32)
    wh = wh.at[:, :n_actions].set(params_f32["wmu"])
    wh = wh.at[:, n_actions:2 * n_actions].set(params_f32["wls"])
    bh = jnp.zeros((1, head), jnp.float32)
    bh = bh.at[:, :n_actions].set(params_f32["bmu"])
    bh = bh.at[:, n_actions:2 * n_actions].set(params_f32["bls"])

    return dict(
        w1=params_f32["w1"].astype(jnp.bfloat16), b1=params_f32["b1"],
        w2=params_f32["w2"].astype(jnp.bfloat16), b2=params_f32["b2"],
        wh=wh.astype(jnp.bfloat16), bh=bh,
        n_actions=int(n_actions),
    )


def actor_forward(state, kparams, *, batch_tile=None):
    """state: (B, D) float32.  kparams: output of prepare_params.  -> (mu, sigma)."""
    B, D = state.shape
    n_actions = kparams["n_actions"]
    head = kparams["wh"].shape[1]          # lane-padded head width (>= 128)
    fc1 = kparams["w1"].shape[1]
    fc2 = kparams["w2"].shape[1]

    # Grid/tile sizing: one grid step for small/medium batches; MXU-matched
    # row tile only when B exceeds the single-step cap.
    if batch_tile is None:
        batch_tile = _mxu_batch_tile()
    if B <= _SINGLE_STEP_CAP:
        TB = _round_up(B, 8)
        B_pad = TB
    else:
        TB = batch_tile
        B_pad = _round_up(B, TB)
    x = state if B_pad == B else jnp.pad(state, ((0, B_pad - B), (0, 0)))
    grid_steps = B_pad // TB

    args = (x, kparams["w1"], kparams["b1"], kparams["w2"], kparams["b2"],
            kparams["wh"], kparams["bh"])

    weight_bytes = sum(int(kparams[k].size) * kparams[k].dtype.itemsize
                       for k in ("w1", "b1", "w2", "b2", "wh", "bh"))
    act_bytes = B_pad * (D + head) * 4
    # Only shard the batch axis across cores (megacore / v7x dual-TC) when
    # there is more than one tile AND activation traffic rivals the resident
    # weight slab; otherwise each core would just duplicate the weight DMA.
    parallel = grid_steps > 1 and act_bytes >= weight_bytes
    dim_sem = ("parallel",) if parallel else ("arbitrary",)

    flops = 2 * B_pad * (D * fc1 + fc1 * fc2 + fc2 * head)
    bytes_accessed = x.size * 4 + weight_bytes + B_pad * head * 4

    def build_and_call(single_buffer_consts):
        def const_spec(a):
            # Weights/biases: full-array blocks with constant index map ->
            # fetched once, VMEM-resident across all batch tiles.
            if single_buffer_consts:
                return pl.BlockSpec(a.shape, lambda i: (0, 0),
                                    pipeline_mode=pl.Buffered(1))
            return pl.BlockSpec(a.shape, lambda i: (0, 0))

        return pl.pallas_call(
            functools.partial(_actor_kernel, n_actions),
            out_shape=jax.ShapeDtypeStruct((B_pad, head), jnp.float32),
            grid=(grid_steps,),
            in_specs=[pl.BlockSpec((TB, D), lambda i: (i, 0))]
                     + [const_spec(a) for a in args[1:]],
            out_specs=pl.BlockSpec((TB, head), lambda i: (i, 0)),
            compiler_params=pltpu.CompilerParams(dimension_semantics=dim_sem),
            cost_estimate=pl.CostEstimate(
                flops=flops, transcendentals=B_pad * head,
                bytes_accessed=bytes_accessed),
        )(*args)

    try:
        out = build_and_call(True)
    except Exception:
        # pipeline_mode / Buffered(1) not accepted on this JAX: default buffering.
        out = build_and_call(False)

    out = out[:B]
    return out[:, :n_actions], out[:, n_actions:2 * n_actions]


def init_linear(key, fan_in, fan_out):
    """PyTorch nn.Linear default init: U(-1/sqrt(fan_in), 1/sqrt(fan_in))."""
    kw, kb = jax.random.split(key)
    bound = 1.0 / jnp.sqrt(float(fan_in))
    w = jax.random.uniform(kw, (fan_in, fan_out), jnp.float32, -bound, bound)
    b = jax.random.uniform(kb, (1, fan_out), jnp.float32, -bound, bound)
    return w, b


def reference_forward_matched(state, kparams):
    """Same op sequence in plain JAX (bf16 matmul inputs, f32 accumulation)."""
    bf, f32 = jnp.bfloat16, jnp.float32
    n = kparams["n_actions"]
    h1 = jnp.maximum(jnp.dot(state.astype(bf), kparams["w1"],
                             preferred_element_type=f32) + kparams["b1"], 0.0)
    h2 = jnp.maximum(jnp.dot(h1.astype(bf), kparams["w2"],
                             preferred_element_type=f32) + kparams["b2"], 0.0)
    head = jnp.dot(h2.astype(bf), kparams["wh"],
                   preferred_element_type=f32) + kparams["bh"]
    mu = head[:, :n]
    sigma = jnp.exp(jnp.clip(head[:, n:2 * n], LOG_SIGMA_MIN, LOG_SIGMA_MAX))
    return mu, sigma


def reference_forward_f32(state, params):
    """Full-f32 reference (matches the PyTorch module's math)."""
    h1 = jnp.maximum(state @ params["w1"] + params["b1"], 0.0)
    h2 = jnp.maximum(h1 @ params["w2"] + params["b2"], 0.0)
    mu = h2 @ params["wmu"] + params["bmu"]
    ls = jnp.clip(h2 @ params["wls"] + params["bls"], LOG_SIGMA_MIN, LOG_SIGMA_MAX)
    return mu, jnp.exp(ls)


if __name__ == "__main__":
    # Shapes consistent with the module: input_dims=(16,), fc1=fc2=256, n_actions=1.
    B, D, FC1, FC2, N_ACT = 8, 16, 256, 256, 1

    key = jax.random.PRNGKey(0)
    k_x, k1, k2, k3, k4, k_x2, k_x3 = jax.random.split(key, 7)

    state = jax.random.normal(k_x, (B, D), jnp.float32)

    w1, b1 = init_linear(k1, D, FC1)
    w2, b2 = init_linear(k2, FC1, FC2)
    wmu, bmu = init_linear(k3, FC2, N_ACT)
    wls, bls = init_linear(k4, FC2, N_ACT)
    params = dict(w1=w1, b1=b1, w2=w2, b2=b2,
                  wmu=wmu, bmu=bmu, wls=wls, bls=bls)
    kparams = prepare_params(params)

    # Small batch: single grid step, lane-padded head.
    mu, sigma = jax.block_until_ready(actor_forward(state, kparams))
    mu_r, sigma_r = reference_forward_matched(state, kparams)
    assert mu.shape == (B, N_ACT) and sigma.shape == (B, N_ACT)
    assert jnp.allclose(mu, mu_r, atol=1e-3, rtol=1e-3)
    assert jnp.allclose(sigma, sigma_r, atol=1e-3, rtol=1e-3)

    # Loose check vs full-f32 reference (only bf16 weight/activation quantization).
    mu_f, sigma_f = reference_forward_f32(state, params)
    assert jnp.allclose(mu, mu_f, atol=5e-2, rtol=5e-2)
    assert jnp.allclose(sigma, sigma_f, atol=5e-2, rtol=5e-2)

    # Medium ragged batch: adaptive TB -> single grid step (B=200 -> TB=208).
    state2 = jax.random.normal(k_x2, (200, D), jnp.float32)
    mu2, sigma2 = jax.block_until_ready(actor_forward(state2, kparams))
    mu2_r, sigma2_r = reference_forward_matched(state2, kparams)
    assert jnp.allclose(mu2, mu2_r, atol=1e-3, rtol=1e-3)
    assert jnp.allclose(sigma2, sigma2_r, atol=1e-3, rtol=1e-3)

    # Large batch: tiled grid with MXU-matched TB; exercises the parallel-axis gate.
    state3 = jax.random.normal(k_x3, (1000, D), jnp.float32)
    mu3, sigma3 = jax.block_until_ready(actor_forward(state3, kparams))
    mu3_r, sigma3_r = reference_forward_matched(state3, kparams)
    assert jnp.allclose(mu3, mu3_r, atol=1e-3, rtol=1e-3)
    assert jnp.allclose(sigma3, sigma3_r, atol=1e-3, rtol=1e-3)

    print("KERNEL_OK")
</pallas_src>

<mosaic_0001>
module attributes {stable_mosaic.version = 11 : i64} {
  func.func @_actor_kernel(%arg0: i32, %arg1: memref<8x16xf32, #tpu.memory_space<vmem>>, %arg2: memref<16x256xbf16, #tpu.memory_space<vmem>>, %arg3: memref<1x256xf32, #tpu.memory_space<vmem>>, %arg4: memref<256x256xbf16, #tpu.memory_space<vmem>>, %arg5: memref<1x256xf32, #tpu.memory_space<vmem>>, %arg6: memref<256x128xbf16, #tpu.memory_space<vmem>>, %arg7: memref<1x128xf32, #tpu.memory_space<vmem>>, %arg8: memref<8x128xf32, #tpu.memory_space<vmem>>) attributes {dimension_semantics = [#tpu.dimension_semantics<arbitrary>], iteration_bounds = array<i64: 1>, scalar_prefetch = 0 : i64, scratch_operands = 0 : i64, tpu.core_type = #tpu.core_type<tc>, window_params = [{transform_indices = @transform_0, window_bounds = array<i64: 8, 16>}, {pipeline_mode = #tpu.pipeline_mode<synchronous>, transform_indices = @transform_1, window_bounds = array<i64: 16, 256>}, {pipeline_mode = #tpu.pipeline_mode<synchronous>, transform_indices = @transform_2, window_bounds = array<i64: 1, 256>}, {pipeline_mode = #tpu.pipeline_mode<synchronous>, transform_indices = @transform_3, window_bounds = array<i64: 256, 256>}, {pipeline_mode = #tpu.pipeline_mode<synchronous>, transform_indices = @transform_4, window_bounds = array<i64: 1, 256>}, {pipeline_mode = #tpu.pipeline_mode<synchronous>, transform_indices = @transform_5, window_bounds = array<i64: 256, 128>}, {pipeline_mode = #tpu.pipeline_mode<synchronous>, transform_indices = @transform_6, window_bounds = array<i64: 1, 128>}, {transform_indices = @transform_7, window_bounds = array<i64: 8, 128>}]} {
    %c0 = arith.constant 0 : index
    %c0_0 = arith.constant 0 : index
    %0 = vector.load %arg1[%c0, %c0_0] : memref<8x16xf32, #tpu.memory_space<vmem>>, vector<8x16xf32>
    %1 = arith.truncf %0 : vector<8x16xf32> to vector<8x16xbf16>
    %c0_1 = arith.constant 0 : index
    %c0_2 = arith.constant 0 : index
    %2 = vector.load %arg2[%c0_1, %c0_2] : memref<16x256xbf16, #tpu.memory_space<vmem>>, vector<16x256xbf16>
    %cst = arith.constant dense<0.000000e+00> : vector<8x256xf32>
    %3 = tpu.matmul %1, %2, %cst {dimension_numbers = #tpu.dot_dimension_numbers<[1], [0], [0], [1], [0, 0, 1, 1], [], []>} : vector<8x16xbf16>, vector<16x256xbf16>, vector<8x256xf32> -> vector<8x256xf32>
    %c0_3 = arith.constant 0 : index
    %c0_4 = arith.constant 0 : index
    %4 = vector.load %arg3[%c0_3, %c0_4] : memref<1x256xf32, #tpu.memory_space<vmem>>, vector<1x256xf32>
    %5 = vector.broadcast %4 : vector<1x256xf32> to vector<8x256xf32>
    %6 = arith.addf %3, %5 : vector<8x256xf32>
    %cst_5 = arith.constant 0.000000e+00 : f32
    %7 = vector.broadcast %cst_5 : f32 to vector<8x256xf32>
    %8 = arith.maximumf %6, %7 : vector<8x256xf32>
    %9 = arith.truncf %8 : vector<8x256xf32> to vector<8x256xbf16>
    %c0_6 = arith.constant 0 : index
    %c0_7 = arith.constant 0 : index
    %10 = vector.load %arg4[%c0_6, %c0_7] : memref<256x256xbf16, #tpu.memory_space<vmem>>, vector<256x256xbf16>
    %cst_8 = arith.constant dense<0.000000e+00> : vector<8x256xf32>
    %11 = tpu.matmul %9, %10, %cst_8 {dimension_numbers = #tpu.dot_dimension_numbers<[1], [0], [0], [1], [0, 0, 1, 1], [], []>} : vector<8x256xbf16>, vector<256x256xbf16>, vector<8x256xf32> -> vector<8x256xf32>
    %c0_9 = arith.constant 0 : index
    %c0_10 = arith.constant 0 : index
    %12 = vector.load %arg5[%c0_9, %c0_10] : memref<1x256xf32, #tpu.memory_space<vmem>>, vector<1x256xf32>
    %13 = vector.broadcast %12 : vector<1x256xf32> to vector<8x256xf32>
    %14 = arith.addf %11, %13 : vector<8x256xf32>
    %cst_11 = arith.constant 0.000000e+00 : f32
    %15 = vector.broadcast %cst_11 : f32 to vector<8x256xf32>
    %16 = arith.maximumf %14, %15 : vector<8x256xf32>
    %17 = arith.truncf %16 : vector<8x256xf32> to vector<8x256xbf16>
    %c0_12 = arith.constant 0 : index
    %c0_13 = arith.constant 0 : index
    %18 = vector.load %arg6[%c0_12, %c0_13] : memref<256x128xbf16, #tpu.memory_space<vmem>>, vector<256x128xbf16>
    %cst_14 = arith.constant dense<0.000000e+00> : vector<8x128xf32>
    %19 = tpu.matmul %17, %18, %cst_14 {dimension_numbers = #tpu.dot_dimension_numbers<[1], [0], [0], [1], [0, 0, 1, 1], [], []>} : vector<8x256xbf16>, vector<256x128xbf16>, vector<8x128xf32> -> vector<8x128xf32>
    %c0_15 = arith.constant 0 : index
    %c0_16 = arith.constant 0 : index
    %20 = vector.load %arg7[%c0_15, %c0_16] : memref<1x128xf32, #tpu.memory_space<vmem>>, vector<1x128xf32>
    %21 = vector.broadcast %20 : vector<1x128xf32> to vector<8x128xf32>
    %22 = arith.addf %19, %21 : vector<8x128xf32>
    %cst_17 = arith.constant -2.000000e+01 : f32
    %cst_18 = arith.constant 2.000000e+00 : f32
    %23 = vector.broadcast %cst_17 : f32 to vector<8x128xf32>
    %24 = arith.maximumf %23, %22 : vector<8x128xf32>
    %25 = vector.broadcast %cst_18 : f32 to vector<8x128xf32>
    %26 = arith.minimumf %25, %24 : vector<8x128xf32>
    %27 = math.exp %26 : vector<8x128xf32>
    %28 = tpu.iota {dimensions = array<i32: 1>} : vector<8x128xi32>
    %c1_i32 = arith.constant 1 : i32
    %29 = vector.broadcast %c1_i32 : i32 to vector<8x128xi32>
    %30 = arith.cmpi sge, %28, %29 : vector<8x128xi32>
    %31 = arith.select %30, %27, %22 : vector<8x128xi1>, vector<8x128xf32>
    %c0_19 = arith.constant 0 : index
    %c0_20 = arith.constant 0 : index
    %32 = vector.load %arg8[%c0_19, %c0_20] : memref<8x128xf32, #tpu.memory_space<vmem>>, vector<8x128xf32>
    tpu.vector_store %arg8[%c0_19, %c0_20], %31 {strides = array<i32>} : memref<8x128xf32, #tpu.memory_space<vmem>>, vector<8x128xf32>,
    return
  }
  func.func @transform_0(%arg0: i32) -> (i32, i32) {
    %c0_i32 = arith.constant 0 : i32
    %c0_i32_0 = arith.constant 0 : i32
    return %arg0, %c0_i32 : i32, i32
  }
  func.func @transform_1(%arg0: i32) -> (i32, i32) {
    %c0_i32 = arith.constant 0 : i32
    %c0_i32_0 = arith.constant 0 : i32
    %c0_i32_1 = arith.constant 0 : i32
    return %c0_i32, %c0_i32_0 : i32, i32
  }
  func.func @transform_2(%arg0: i32) -> (i32, i32) {
    %c0_i32 = arith.constant 0 : i32
    %c0_i32_0 = arith.constant 0 : i32
    %c0_i32_1 = arith.constant 0 : i32
    return %c0_i32, %c0_i32_0 : i32, i32
  }
  func.func @transform_3(%arg0: i32) -> (i32, i32) {
    %c0_i32 = arith.constant 0 : i32
    %c0_i32_0 = arith.constant 0 : i32
    %c0_i32_1 = arith.constant 0 : i32
    return %c0_i32, %c0_i32_0 : i32, i32
  }
  func.func @transform_4(%arg0: i32) -> (i32, i32) {
    %c0_i32 = arith.constant 0 : i32
    %c0_i32_0 = arith.constant 0 : i32
    %c0_i32_1 = arith.constant 0 : i32
    return %c0_i32, %c0_i32_0 : i32, i32
  }
  func.func @transform_5(%arg0: i32) -> (i32, i32) {
    %c0_i32 = arith.constant 0 : i32
    %c0_i32_0 = arith.constant 0 : i32
    %c0_i32_1 = arith.constant 0 : i32
    return %c0_i32, %c0_i32_0 : i32, i32
  }
  func.func @transform_6(%arg0: i32) -> (i32, i32) {
    %c0_i32 = arith.constant 0 : i32
    %c0_i32_0 = arith.constant 0 : i32
    %c0_i32_1 = arith.constant 0 : i32
    return %c0_i32, %c0_i32_0 : i32, i32
  }
  func.func @transform_7(%arg0: i32) -> (i32, i32) {
    %c0_i32 = arith.constant 0 : i32
    %c0_i32_0 = arith.constant 0 : i32
    return %arg0, %c0_i32 : i32, i32
  }
}

module attributes {stable_mosaic.version = 11 : i64} {
  func.func @_actor_kernel(%arg0: i32, %arg1: memref<8x16xf32, #tpu.memory_space<vmem>>, %arg2: memref<16x256xbf16, #tpu.memory_space<vmem>>, %arg3: memref<1x256xf32, #tpu.memory_space<vmem>>, %arg4: memref<256x256xbf16, #tpu.memory_space<vmem>>, %arg5: memref<1x256xf32, #tpu.memory_space<vmem>>, %arg6: memref<256x128xbf16, #tpu.memory_space<vmem>>, %arg7: memref<1x128xf32, #tpu.memory_space<vmem>>, %arg8: memref<8x128xf32, #tpu.memory_space<vmem>>) attributes {dimension_semantics = [#tpu.dimension_semantics<arbitrary>], iteration_bounds = array<i64: 1>, scalar_prefetch = 0 : i64, scratch_operands = 0 : i64, tpu.core_type = #tpu.core_type<tc>, window_params = [{transform_indices = @transform_0, window_bounds = array<i64: 8, 16>}, {pipeline_mode = #tpu.pipeline_mode<synchronous>, transform_indices = @transform_1, window_bounds = array<i64: 16, 256>}, {pipeline_mode = #tpu.pipeline_mode<synchronous>, transform_indices = @transform_2, window_bounds = array<i64: 1, 256>}, {pipeline_mode = #tpu.pipeline_mode<synchronous>, transform_indices = @transform_3, window_bounds = array<i64: 256, 256>}, {pipeline_mode = #tpu.pipeline_mode<synchronous>, transform_indices = @transform_4, window_bounds = array<i64: 1, 256>}, {pipeline_mode = #tpu.pipeline_mode<synchronous>, transform_indices = @transform_5, window_bounds = array<i64: 256, 128>}, {pipeline_mode = #tpu.pipeline_mode<synchronous>, transform_indices = @transform_6, window_bounds = array<i64: 1, 128>}, {transform_indices = @transform_7, window_bounds = array<i64: 8, 128>}]} {
    %c0 = arith.constant 0 : index
    %c0_0 = arith.constant 0 : index
    %0 = vector.load %arg1[%c0, %c0_0] : memref<8x16xf32, #tpu.memory_space<vmem>>, vector<8x16xf32>
    %1 = arith.truncf %0 : vector<8x16xf32> to vector<8x16xbf16>
    %c0_1 = arith.constant 0 : index
    %c0_2 = arith.constant 0 : index
    %2 = vector.load %arg2[%c0_1, %c0_2] : memref<16x256xbf16, #tpu.memory_space<vmem>>, vector<16x256xbf16>
    %cst = arith.constant dense<0.000000e+00> : vector<8x256xf32>
    %3 = tpu.matmul %1, %2, %cst {dimension_numbers = #tpu.dot_dimension_numbers<[1], [0], [0], [1], [0, 0, 1, 1], [], []>} : vector<8x16xbf16>, vector<16x256xbf16>, vector<8x256xf32> -> vector<8x256xf32>
    %c0_3 = arith.constant 0 : index
    %c0_4 = arith.constant 0 : index
    %4 = vector.load %arg3[%c0_3, %c0_4] : memref<1x256xf32, #tpu.memory_space<vmem>>, vector<1x256xf32>
    %5 = vector.broadcast %4 : vector<1x256xf32> to vector<8x256xf32>
    %6 = arith.addf %3, %5 : vector<8x256xf32>
    %cst_5 = arith.constant 0.000000e+00 : f32
    %7 = vector.broadcast %cst_5 : f32 to vector<8x256xf32>
    %8 = arith.maximumf %6, %7 : vector<8x256xf32>
    %9 = arith.truncf %8 : vector<8x256xf32> to vector<8x256xbf16>
    %c0_6 = arith.constant 0 : index
    %c0_7 = arith.constant 0 : index
    %10 = vector.load %arg4[%c0_6, %c0_7] : memref<256x256xbf16, #tpu.memory_space<vmem>>, vector<256x256xbf16>
    %cst_8 = arith.constant dense<0.000000e+00> : vector<8x256xf32>
    %11 = tpu.matmul %9, %10, %cst_8 {dimension_numbers = #tpu.dot_dimension_numbers<[1], [0], [0], [1], [0, 0, 1, 1], [], []>} : vector<8x256xbf16>, vector<256x256xbf16>, vector<8x256xf32> -> vector<8x256xf32>
    %c0_9 = arith.constant 0 : index
    %c0_10 = arith.constant 0 : index
    %12 = vector.load %arg5[%c0_9, %c0_10] : memref<1x256xf32, #tpu.memory_space<vmem>>, vector<1x256xf32>
    %13 = vector.broadcast %12 : vector<1x256xf32> to vector<8x256xf32>
    %14 = arith.addf %11, %13 : vector<8x256xf32>
    %cst_11 = arith.constant 0.000000e+00 : f32
    %15 = vector.broadcast %cst_11 : f32 to vector<8x256xf32>
    %16 = arith.maximumf %14, %15 : vector<8x256xf32>
    %17 = arith.truncf %16 : vector<8x256xf32> to vector<8x256xbf16>
    %c0_12 = arith.constant 0 : index
    %c0_13 = arith.constant 0 : index
    %18 = vector.load %arg6[%c0_12, %c0_13] : memref<256x128xbf16, #tpu.memory_space<vmem>>, vector<256x128xbf16>
    %cst_14 = arith.constant dense<0.000000e+00> : vector<8x128xf32>
    %19 = tpu.matmul %17, %18, %cst_14 {dimension_numbers = #tpu.dot_dimension_numbers<[1], [0], [0], [1], [0, 0, 1, 1], [], []>} : vector<8x256xbf16>, vector<256x128xbf16>, vector<8x128xf32> -> vector<8x128xf32>
    %c0_15 = arith.constant 0 : index
    %c0_16 = arith.constant 0 : index
    %20 = vector.load %arg7[%c0_15, %c0_16] : memref<1x128xf32, #tpu.memory_space<vmem>>, vector<1x128xf32>
    %21 = vector.broadcast %20 : vector<1x128xf32> to vector<8x128xf32>
    %22 = arith.addf %19, %21 : vector<8x128xf32>
    %cst_17 = arith.constant -2.000000e+01 : f32
    %cst_18 = arith.constant 2.000000e+00 : f32
    %23 = vector.broadcast %cst_17 : f32 to vector<8x128xf32>
    %24 = arith.maximumf %23, %22 : vector<8x128xf32>
    %25 = vector.broadcast %cst_18 : f32 to vector<8x128xf32>
    %26 = arith.minimumf %25, %24 : vector<8x128xf32>
    %27 = math.exp %26 : vector<8x128xf32>
    %28 = tpu.iota {dimensions = array<i32: 1>} : vector<8x128xi32>
    %c1_i32 = arith.constant 1 : i32
    %29 = vector.broadcast %c1_i32 : i32 to vector<8x128xi32>
    %30 = arith.cmpi sge, %28, %29 : vector<8x128xi32>
    %31 = arith.select %30, %27, %22 : vector<8x128xi1>, vector<8x128xf32>
    %c0_19 = arith.constant 0 : index
    %c0_20 = arith.constant 0 : index
    %32 = vector.load %arg8[%c0_19, %c0_20] : memref<8x128xf32, #tpu.memory_space<vmem>>, vector<8x128xf32>
    tpu.vector_store %arg8[%c0_19, %c0_20], %31 {strides = array<i32>} : memref<8x128xf32, #tpu.memory_space<vmem>>, vector<8x128xf32>,
    return
  }
  func.func @transform_0(%arg0: i32) -> (i32, i32) {
    %c0_i32 = arith.constant 0 : i32
    %c0_i32_0 = arith.constant 0 : i32
    return %arg0, %c0_i32 : i32, i32
  }
  func.func @transform_1(%arg0: i32) -> (i32, i32) {
    %c0_i32 = arith.constant 0 : i32
    %c0_i32_0 = arith.constant 0 : i32
    %c0_i32_1 = arith.constant 0 : i32
    return %c0_i32, %c0_i32_0 : i32, i32
  }
  func.func @transform_2(%arg0: i32) -> (i32, i32) {
    %c0_i32 = arith.constant 0 : i32
    %c0_i32_0 = arith.constant 0 : i32
    %c0_i32_1 = arith.constant 0 : i32
    return %c0_i32, %c0_i32_0 : i32, i32
  }
  func.func @transform_3(%arg0: i32) -> (i32, i32) {
    %c0_i32 = arith.constant 0 : i32
    %c0_i32_0 = arith.constant 0 : i32
    %c0_i32_1 = arith.constant 0 : i32
    return %c0_i32, %c0_i32_0 : i32, i32
  }
  func.func @transform_4(%arg0: i32) -> (i32, i32) {
    %c0_i32 = arith.constant 0 : i32
    %c0_i32_0 = arith.constant 0 : i32
    %c0_i32_1 = arith.constant 0 : i32
    return %c0_i32, %c0_i32_0 : i32, i32
  }
  func.func @transform_5(%arg0: i32) -> (i32, i32) {
    %c0_i32 = arith.constant 0 : i32
    %c0_i32_0 = arith.constant 0 : i32
    %c0_i32_1 = arith.constant 0 : i32
    return %c0_i32, %c0_i32_0 : i32, i32
  }
  func.func @transform_6(%arg0: i32) -> (i32, i32) {
    %c0_i32 = arith.constant 0 : i32
    %c0_i32_0 = arith.constant 0 : i32
    %c0_i32_1 = arith.constant 0 : i32
    return %c0_i32, %c0_i32_0 : i32, i32
  }
  func.func @transform_7(%arg0: i32) -> (i32, i32) {
    %c0_i32 = arith.constant 0 : i32
    %c0_i32_0 = arith.constant 0 : i32
    return %arg0, %c0_i32 : i32, i32
  }
}

</mosaic_0001>

<bundles_post_ra>
// kernel: tpu_custom_call.1
= control target key start
LH: loop header
LB: loop body
LE: loop exit
PB: predicated region body
PF: predicated region fallthrough
CT: control target
= control target key end

     0   :  { %12 = vsyncpa [#allocation3], 0  ;;  %s941_s0 = inlined_call_operand.hbm [shape: f32[8,16], index: 0, kind: input, shape index: {}]   ;;  %s942_s1 = inlined_call_operand.hbm [shape: bf16[16,256], index: 1, kind: input, shape index: {}]   ;;  %s943_s2 = inlined_call_operand.vmem [shape: f32[1,256], index: 2, kind: input, shape index: {}]   ;;  %s944_s3 = inlined_call_operand.hbm [shape: bf16[256,256], index: 3, kind: input, shape index: {}]   ;;  %s945_s4 = inlined_call_operand.vmem [shape: f32[1,256], index: 4, kind: input, shape index: {}]   ;;  %s946_s5 = inlined_call_operand.hbm [shape: bf16[256,128], index: 5, kind: input, shape index: {}]   ;;  %s947_s6 = inlined_call_operand.vmem [shape: f32[1,128], index: 6, kind: input, shape index: {}]   ;;  %s948_s7 = inlined_call_operand.hbm [shape: f32[8,128], index: 7, kind: output, shape index: {}]  }
   0x1   :  { %13 = vsyncpa [#allocation6], 0 }
   0x2   :  { %14 = vsyncpa [#allocation9], 0 }
   0x3   :  { %15 = vsyncpa [#allocation4], 0  ;;  %s867_s24 = smov [#allocation5]  }
   0x4   :  { %s31_s25 = sshll.u32 %s867_s24, 4  ;;  %s32_s25 = int_to_ptr.vmem [resolvable:$true] %s31_s25 }
   0x5   :  { %s767_s26 = scalar_lea.vmem %s32_s25, 256  ;;  %p772_p1 = scmp.lt.s32.totalorder %s32_s25, %s32_s25 }
   0x6   :  { %p768_p0 = scmp.ne.s32.totalorder %s32_s25, %s767_s26  ;;  %p773_p2 = scmp.lt.s32.totalorder %s767_s26, %s767_s26 }
   0x8   :  { %p774_p3 = por %p773_p2, %p772_p1 }
   0xa   :  { %p775_p4 = pnand %p774_p3, %p768_p0 }
   0xc   :  { %778 = shalt.err (!%p775_p4)
}
   0xd   :  { %s868_s27 = smov 128   ;;  %s869_s28 = smov 8  }
   0xe   :  { %37 = dma.hbm_to_vmem [thread:$0]  %s942_s1, 256, %s32_s25, [#allocation6], %s868_s27, %s868_s27, %s869_s28  }
   0xf   :  { %s870_s8 = smov [#allocation2]   ;;  %s871_s10 = smov [#allocation7]  }
  0x10   :  { %s22_s9 = sshll.u32 %s870_s8, 4  ;;  %s45_s11 = sshll.u32 %s871_s10, 4  ;;  %s23_s9 = int_to_ptr.vmem [resolvable:$true] %s22_s9  ;;  %s46_s11 = int_to_ptr.vmem [resolvable:$true] %s45_s11 }
  0x11   :  { %s787_s12 = scalar_lea.vmem %s23_s9, 128  ;;  %p792_p6 = scmp.lt.s32.totalorder %s23_s9, %s23_s9 }
  0x12   :  { %p788_p5 = scmp.ne.s32.totalorder %s23_s9, %s787_s12  ;;  %p793_p7 = scmp.lt.s32.totalorder %s787_s12, %s787_s12 }
  0x14   :  { %p794_p8 = por %p793_p7, %p792_p6 }
  0x16   :  { %p795_p9 = pnand %p794_p8, %p788_p5 }
  0x18   :  { %798 = shalt.err (!%p795_p9)
}
  0x19   :  { %25 = dma.hbm_to_vmem [thread:$0]  %s941_s0, 128, %s23_s9, [#allocation3]  }
  0x1a   :  { %s807_s15 = scalar_lea.vmem %s46_s11, 4096  ;;  %p812_p11 = scmp.lt.s32.totalorder %s46_s11, %s46_s11 }
  0x1b   :  { %p808_p10 = scmp.ne.s32.totalorder %s46_s11, %s807_s15  ;;  %p813_p12 = scmp.lt.s32.totalorder %s807_s15, %s807_s15 }
  0x1d   :  { %p814_p13 = por %p813_p12, %p812_p11 }
  0x1f   :  { %p815_p0 = pnand %p814_p13, %p808_p10 }
  0x21   :  { %818 = shalt.err (!%p815_p0)
}
  0x22   :  { %51 = dma.hbm_to_vmem [thread:$0]  %s944_s3, 4096, %s46_s11, [#allocation6], %s868_s27, %s868_s27, %s869_s28  }
  0x23   :  { %s872_s17 = smov [#allocation8]  }
  0x24   :  { %s59_s18 = sshll.u32 %s872_s17, 4  ;;  %s60_s18 = int_to_ptr.vmem [resolvable:$true] %s59_s18 }
  0x25   :  { %s827_s19 = scalar_lea.vmem %s60_s18, 2048  ;;  %p832_p2 = scmp.lt.s32.totalorder %s60_s18, %s60_s18 }
  0x26   :  { %p828_p1 = scmp.ne.s32.totalorder %s60_s18, %s827_s19  ;;  %p833_p3 = scmp.lt.s32.totalorder %s827_s19, %s827_s19 }
  0x28   :  { %p834_p4 = por %p833_p3, %p832_p2 }
  0x2a   :  { %p835_p5 = pnand %p834_p4, %p828_p1 }
  0x2c   :  { %838 = shalt.err (!%p835_p5)
}
  0x2d   :  { %s873_s0 = smov 64   ;;  %s874_s20 = smov 4  }
  0x2e   :  { %65 = dma.hbm_to_vmem [thread:$0]  %s946_s5, 2048, %s60_s18, [#allocation9], %s873_s0, %s873_s0, %s874_s20  }
  0x2f   :  { %859 = dma.done.wait [#allocation3], 128  }
  0x30   :  { %860 = vsyncadd [#allocation3], 4294967168 }
  0x31   :  { %861 = dma.done.wait [#allocation6], 4352  }
  0x32   :  { %862 = vsyncadd [#allocation6], 4294962944 }
  0x33   :  { %863 = dma.done.wait [#allocation9], 2048  }
  0x34   :  { %864 = vsyncadd [#allocation9], 4294965248  ;;  %v875_v0 = vmov 0   ;;  %v690_v1 = vld [vmem:[#allocation5 + $0x4] ss:$8 sps:$4 sm:$0xff]   ;;  %v81_v3 = vld [vmem:[#allocation2] sm:$0xff]  ;;  %v87_v49 = vlaneseq }
  0x35   :  { %143 = vmatprep.mubr.bf16.mxu0 %v875_v0  ;;  %v692_v2 = vld [vmem:[#allocation5] ss:$8 sps:$4 sm:$0xff]   ;;  %125 = vmatprep.subr.bf16.mxu0 %v690_v1  ;;  %v82_v4 = vpack.c.bf16 %v81_v3, %v81_v3  ;;  %v693_v5 = vld [vmem:[#allocation7 + $0x74] ss:$8 sps:$4 sm:$0xff]   ;;  %vm107_vm0 = vcmask 130048   ;;  %v745_v41 = vld [vmem:[#allocation8 + $0x68] sm:$0xff]  }
  0x36   :  { %v695_v6 = vld [vmem:[#allocation7 + $0x70] ss:$8 sps:$4 sm:$0xff]   ;;  %126 = vmatpush1.bf16.msra.mxu0 %v692_v2  ;;  %v696_v7 = vld [vmem:[#allocation7 + $0x64] ss:$8 sps:$4 sm:$0xff]   ;;  %360 = vmatprep.subr.bf16.mxu1 %v693_v5  ;;  %v698_v8 = vld [vmem:[#allocation7 + $0x60] ss:$8 sps:$4 sm:$0xff]  }
  0x37   :  { %361 = vmatpush1.bf16.msra.mxu1 %v695_v6  ;;  %v699_v9 = vld [vmem:[#allocation7 + $0x54] ss:$8 sps:$4 sm:$0xff]   ;;  %v701_v10 = vld [vmem:[#allocation7 + $0x50] ss:$8 sps:$4 sm:$0xff]   ;;  %v702_v11 = vld [vmem:[#allocation7 + $0x44] ss:$8 sps:$4 sm:$0xff]  }
  0x38   :  { %362 = vmatprep.subr.bf16.mxu1 %v696_v7  ;;  %v704_v12 = vld [vmem:[#allocation7 + $0x40] ss:$8 sps:$4 sm:$0xff]   ;;  %v705_v13 = vld [vmem:[#allocation7 + $0x34] ss:$8 sps:$4 sm:$0xff]   ;;  %v707_v14 = vld [vmem:[#allocation7 + $0x30] ss:$8 sps:$4 sm:$0xff]  }
  0x39   :  { %608 = vmatmul.mubr.msk.bf16.vlgmr.msra.gmra.mxu0 %vm107_vm0, %v82_v4  ;;  %v708_v15 = vld [vmem:[#allocation7 + $0x24] ss:$8 sps:$4 sm:$0xff]   ;;  %v710_v16 = vld [vmem:[#allocation7 + $0x20] ss:$8 sps:$4 sm:$0xff]   ;;  %v711_v17 = vld [vmem:[#allocation7 + $0x14] ss:$8 sps:$4 sm:$0xff]  }
  0x3a   :  { %v713_v18 = vld [vmem:[#allocation7 + $0x10] ss:$8 sps:$4 sm:$0xff]   ;;  %v714_v19 = vld [vmem:[#allocation7 + $0x4] ss:$8 sps:$4 sm:$0xff]   ;;  %v716_v20 = vld [vmem:[#allocation7] ss:$8 sps:$4 sm:$0xff]  }
  0x3b   :  { %363 = vmatpush1.bf16.msra.mxu1 %v698_v8  ;;  %v717_v21 = vld [vmem:[#allocation7 + $0xf4] ss:$8 sps:$4 sm:$0xff]   ;;  %v719_v22 = vld [vmem:[#allocation7 + $0xf0] ss:$8 sps:$4 sm:$0xff]   ;;  %v720_v23 = vld [vmem:[#allocation7 + $0xe4] ss:$8 sps:$4 sm:$0xff]  }
  0x3c   :  { %364 = vmatprep.subr.bf16.mxu1 %v699_v9  ;;  %v722_v24 = vld [vmem:[#allocation7 + $0xe0] ss:$8 sps:$4 sm:$0xff]   ;;  %v723_v25 = vld [vmem:[#allocation7 + $0xd4] ss:$8 sps:$4 sm:$0xff]   ;;  %v725_v26 = vld [vmem:[#allocation7 + $0xd0] ss:$8 sps:$4 sm:$0xff]  }
  0x3d   :  { %v726_v27 = vld [vmem:[#allocation7 + $0xc4] ss:$8 sps:$4 sm:$0xff]   ;;  %v728_v28 = vld [vmem:[#allocation7 + $0xc0] ss:$8 sps:$4 sm:$0xff]   ;;  %v729_v29 = vld [vmem:[#allocation7 + $0xb4] ss:$8 sps:$4 sm:$0xff]  }
  0x3e   :  { %v731_v30 = vld [vmem:[#allocation7 + $0xb0] ss:$8 sps:$4 sm:$0xff]   ;;  %v732_v31 = vld [vmem:[#allocation7 + $0xa4] ss:$8 sps:$4 sm:$0xff]   ;;  %v734_v32 = vld [vmem:[#allocation7 + $0xa0] ss:$8 sps:$4 sm:$0xff]  }
  0x3f   :  { %365 = vmatpush1.bf16.msra.mxu1 %v701_v10  ;;  %v735_v33 = vld [vmem:[#allocation7 + $0x94] ss:$8 sps:$4 sm:$0xff]   ;;  %v737_v34 = vld [vmem:[#allocation7 + $0x90] ss:$8 sps:$4 sm:$0xff]   ;;  %v738_v35 = vld [vmem:[#allocation7 + $0x84] ss:$8 sps:$4 sm:$0xff]  }
  0x40   :  { %366 = vmatprep.subr.bf16.mxu1 %v702_v11  ;;  %v740_v36 = vld [vmem:[#allocation7 + $0x80] ss:$8 sps:$4 sm:$0xff]   ;;  %v741_v37 = vld [vmem:[#allocation8 + $0x78] sm:$0xff]   ;;  %v743_v39 = vld [vmem:[#allocation8 + $0x70] sm:$0xff]   ;;  %v88_v50 = vshrl.u32 %v87_v49, 7 }
  0x41   :  { %v742_v38 = vld [vmem:[#allocation8 + $0x38] sm:$0xff]   ;;  %658 = vmatprep.subr.bf16.mxu0 %v741_v37  ;;  %v744_v40 = vld [vmem:[#allocation8 + $0x30] sm:$0xff]   ;;  %v746_v42 = vld [vmem:[#allocation8 + $0x28] sm:$0xff]  }
  0x42   :  { %659 = vmatpush3.bf16.msra.mxu0 %v742_v38  ;;  %v747_v43 = vld [vmem:[#allocation8 + $0x60] sm:$0xff]   ;;  %v749_v45 = vld [vmem:[#allocation8 + $0x58] sm:$0xff]   ;;  %v751_v47 = vld [vmem:[#allocation8 + $0x50] sm:$0xff]   ;;  %v89_v51 = vsub.s32 0, %v88_v50  ;;  %v93_v53 = vsub.s32 1, %v88_v50 }
  0x43   :  { %367 = vmatpush1.bf16.msra.mxu1 %v704_v12  ;;  %660 = vmatprep.subr.bf16.mxu0 %v743_v39  ;;  %v748_v44 = vld [vmem:[#allocation8 + $0x20] sm:$0xff]   ;;  %v750_v46 = vld [vmem:[#allocation8 + $0x18] sm:$0xff]   ;;  %v752_v48 = vld [vmem:[#allocation8 + $0x10] sm:$0xff]  }
  0x44   :  { %368 = vmatprep.subr.bf16.mxu1 %v705_v13  ;;  %v85_v52 = vld [vmem:[%s943_s2] sm:$0x3]  ;;  %v755_v4 = vld [vmem:[#allocation8 + $0x40] sm:$0xff]  }
  0x45   :  { %v90_v54 = vrot.slane %v85_v52, %v89_v51  ;;  %v94_v55 = vrot.slane %v85_v52, %v93_v53  ;;  %v753_v2 = vld [vmem:[#allocation8 + $0x48] sm:$0xff]   ;;  %v756_v5 = vld [vmem:[#allocation8] sm:$0xff]  }
  0x46   :  { %661 = vmatpush3.bf16.msra.mxu0 %v744_v40  ;;  %v754_v3 = vld [vmem:[#allocation8 + $0x8] sm:$0xff]  }
  0x47   :  { %369 = vmatpush1.bf16.msra.mxu1 %v707_v14  ;;  %662 = vmatprep.subr.bf16.mxu0 %v745_v41  ;;  %v188_v6 = vld [vmem:[%s945_s4] sm:$0x3]  ;;  %s876_s4 = smov [#allocation10]  }
  0x48   :  { %370 = vmatprep.subr.bf16.mxu1 %v708_v15  ;;  %v193_v7 = vrot.slane %v188_v6, %v89_v51  ;;  %v197_v8 = vrot.slane %v188_v6, %v93_v53  ;;  %s595_s26 = sshll.u32 %s876_s4, 4  ;;  %s596_s26 = int_to_ptr.vmem [resolvable:$true] %s595_s26 }
  0x49   :  { %s839_s27 = scalar_lea.vmem %s596_s26, 128  ;;  %p844_p7 = scmp.lt.s32.totalorder %s596_s26, %s596_s26 }
  0x4a   :  { %663 = vmatpush3.bf16.msra.mxu0 %v746_v42  ;;  %p840_p6 = scmp.ne.s32.totalorder %s596_s26, %s839_s27  ;;  %p845_p8 = scmp.lt.s32.totalorder %s839_s27, %s839_s27 }
  0x4b   :  { %371 = vmatpush1.bf16.msra.mxu1 %v710_v16  ;;  %664 = vmatprep.subr.bf16.mxu0 %v747_v43 }
  0x4c   :  { %372 = vmatprep.subr.bf16.mxu1 %v711_v17  ;;  %p846_p9 = por %p845_p8, %p844_p7 }
  0x4e   :  { %665 = vmatpush3.bf16.msra.mxu0 %v748_v44  ;;  %p847_p10 = pnand %p846_p9, %p840_p6 }
  0x4f   :  { %373 = vmatpush1.bf16.msra.mxu1 %v713_v18  ;;  %666 = vmatprep.subr.bf16.mxu0 %v749_v45 }
  0x50   :  { %374 = vmatprep.subr.bf16.mxu1 %v714_v19 }
  0x52   :  { %667 = vmatpush3.bf16.msra.mxu0 %v750_v46 }
  0x53   :  { %375 = vmatpush1.bf16.msra.mxu1 %v716_v20  ;;  %668 = vmatprep.subr.bf16.mxu0 %v751_v47  ;;  %v641_v20 = vld [vmem:[%s947_s6] ss:$0 sm:$0xff] }
  0x54   :  { %376 = vmatprep.subr.bf16.mxu1 %v717_v21 }
  0x56   :  { %669 = vmatpush3.bf16.msra.mxu0 %v752_v48 }
  0x57   :  { %377 = vmatpush2.bf16.msra.mxu1 %v719_v22  ;;  %670 = vmatprep.subr.bf16.mxu0 %v753_v2 }
  0x58   :  { %378 = vmatprep.subr.bf16.mxu1 %v720_v23 }
  0x5a   :  { %671 = vmatpush3.bf16.msra.mxu0 %v754_v3 }
  0x5b   :  { %379 = vmatpush2.bf16.msra.mxu1 %v722_v24  ;;  %672 = vmatprep.subr.bf16.mxu0 %v755_v4 }
  0x5c   :  { %380 = vmatprep.subr.bf16.mxu1 %v723_v25 }
  0x5e   :  { %673 = vmatpush3.bf16.msra.mxu0 %v756_v5 }
  0x5f   :  { %381 = vmatpush2.bf16.msra.mxu1 %v725_v26 }
  0x60   :  { %382 = vmatprep.subr.bf16.mxu1 %v726_v27 }
  0x63   :  { %383 = vmatpush2.bf16.msra.mxu1 %v728_v28 }
  0x64   :  { %384 = vmatprep.subr.bf16.mxu1 %v729_v29  ;;  %v585_v29 = vand.u32 127, %v87_v49 }
  0x66   :  { %vm586_vm1 = vcmp.ge.s32.totalorder %v585_v29, 1 }
  0x67   :  { %385 = vmatpush2.bf16.msra.mxu1 %v731_v30 }
  0x68   :  { %386 = vmatprep.subr.bf16.mxu1 %v732_v31 }
  0x6b   :  { %387 = vmatpush2.bf16.msra.mxu1 %v734_v32 }
  0x6c   :  { %388 = vmatprep.subr.bf16.mxu1 %v735_v33 }
  0x6f   :  { %389 = vmatpush2.bf16.msra.mxu1 %v737_v34 }
  0x70   :  { %390 = vmatprep.subr.bf16.mxu1 %v738_v35 }
  0x73   :  { %391 = vmatpush2.bf16.msra.mxu1 %v740_v36 }
  0xf9   :  { %v145_v56 = vpop.f32.mrf.mxu0 }
  0xfa   :  { %v146_v57 = vadd.f32 %v145_v56, %v90_v54 }
  0xfb   :  { %v147_v58 = vpop.f32.mrf.mxu0 }
  0xfc   :  { %v148_v59 = vadd.f32 %v147_v58, %v94_v55  ;;  %v152_v60 = vmax.f32 %v146_v57, 0.0 }
  0xfd   :  { %v149_v61 = vpop.f32.mrf.mxu0 }
  0xfe   :  { %v153_v62 = vmax.f32 %v148_v59, 0.0  ;;  %v154_v1 = vpack.c.bf16 %v152_v60, %v152_v60 }
  0xff   :  { %v150_v63 = vpop.f32.mrf.mxu0 }
 0x100   :  { %v155_v0 = vpack.c.bf16 %v153_v62, %v153_v62 }
 0x102   :  { %392 = vmatprep.mubr.bf16.mxu1 %v155_v0 }
 0x103   :  { %393 = vmatmul.mubr.bf16.vlgmr.msra.gmra.mxu1 %v154_v1 }
 0x1c3   :  { %v394_v9 = vpop.f32.mrf.mxu1 }
 0x1c4   :  { %v395_v10 = vadd.f32 %v394_v9, %v193_v7 }
 0x1c5   :  { %v396_v11 = vpop.f32.mrf.mxu1 }
 0x1c6   :  { %v397_v12 = vadd.f32 %v396_v11, %v197_v8  ;;  %v401_v13 = vmax.f32 %v395_v10, 0.0 }
 0x1c7   :  { %v398_v14 = vpop.f32.mrf.mxu1 }
 0x1c8   :  { %v402_v15 = vmax.f32 %v397_v12, 0.0  ;;  %v403_v18 = vpack.c.bf16 %v401_v13, %v401_v13 }
 0x1c9   :  { %v399_v16 = vpop.f32.mrf.mxu1 }
 0x1ca   :  { %v404_v17 = vpack.c.bf16 %v402_v15, %v402_v15 }
 0x1cc   :  { %572 = vmatprep.mubr.bf16.mxu0 %v404_v17 }
 0x1cd   :  { %573 = vmatmul.mubr.bf16.vlgmr.msra.gmra.mxu0 %v403_v18 }
 0x28d   :  { %v674_v19 = vpop.f32.mrf.mxu0 }
 0x28f   :  { %v675_v21 = vpop.f32.mrf.mxu0 }
 0x290   :  { %v676_v22 = vadd.f32 %v675_v21, %v674_v19 }
 0x291   :  { %v677_v23 = vpop.f32.mrf.mxu0 }
 0x292   :  { %v575_v24 = vadd.f32 %v676_v22, %v641_v20 }
 0x293   :  { %v678_v25 = vpop.f32.mrf.mxu0 }
 0x294   :  { %v580_v26 = vmax.f32 %v575_v24, -20.0 }
 0x296   :  { %v581_v27 = vmin.f32 %v580_v26, 2.0 }
 0x298   :  { %v582_v28 = vmul.f32 1.442695, %v581_v27 }
 0x29a   :  { %757 = vpow2.f32 %v582_v28 }
 0x2a7   :  { %v758_v30 = vpop.eup %757 }
 0x2a8   :  { %v587_v31 = vsel %vm586_vm1, %v758_v30, %v575_v24 }
 0x2a9   :  { %588 = vst [vmem:[#allocation10] sm:$0xff] %v587_v31 }
 0x2aa   :  { %850 = shalt.err (!%p847_p10)
}
 0x2ab   :  { %598 = dma.vmem_to_hbm [thread:$0]  %s596_s26, 128, %s948_s7, [#allocation4]  }
 0x2ac   :  { %865 = dma.done.wait [#allocation4], 128  }
 0x2ad   :  { %866 = vsyncadd [#allocation4], 4294967168 }
 0x2ae   :  { %602 = vsyncpa [#allocation3], 1 }
 0x2af   :  { %603 = vsyncpa [#allocation6], 1 }
 0x2b0   :  { %604 = vsyncpa [#allocation9], 1 }
 0x2b1   :  { %605 = vsyncpa [#allocation4], 1 }

// kernel: tpu_custom_call.1
= control target key start
LH: loop header
LB: loop body
LE: loop exit
PB: predicated region body
PF: predicated region fallthrough
CT: control target
= control target key end

     0   :  { %12 = vsyncpa [#allocation3], 0  ;;  %s941_s0 = inlined_call_operand.hbm [shape: f32[8,16], index: 0, kind: input, shape index: {}]   ;;  %s942_s1 = inlined_call_operand.hbm [shape: bf16[16,256], index: 1, kind: input, shape index: {}]   ;;  %s943_s2 = inlined_call_operand.vmem [shape: f32[1,256], index: 2, kind: input, shape index: {}]   ;;  %s944_s3 = inlined_call_operand.hbm [shape: bf16[256,256], index: 3, kind: input, shape index: {}]   ;;  %s945_s4 = inlined_call_operand.vmem [shape: f32[1,256], index: 4, kind: input, shape index: {}]   ;;  %s946_s5 = inlined_call_operand.hbm [shape: bf16[256,128], index: 5, kind: input, shape index: {}]   ;;  %s947_s6 = inlined_call_operand.vmem [shape: f32[1,128], index: 6, kind: input, shape index: {}]   ;;  %s948_s7 = inlined_call_operand.hbm [shape: f32[8,128], index: 7, kind: output, shape index: {}]  }
   0x1   :  { %13 = vsyncpa [#allocation6], 0 }
   0x2   :  { %14 = vsyncpa [#allocation9], 0 }
   0x3   :  { %15 = vsyncpa [#allocation4], 0  ;;  %s867_s24 = smov [#allocation5]  }
   0x4   :  { %s31_s25 = sshll.u32 %s867_s24, 4  ;;  %s32_s25 = int_to_ptr.vmem [resolvable:$true] %s31_s25 }
   0x5   :  { %s767_s26 = scalar_lea.vmem %s32_s25, 256  ;;  %p772_p1 = scmp.lt.s32.totalorder %s32_s25, %s32_s25 }
   0x6   :  { %p768_p0 = scmp.ne.s32.totalorder %s32_s25, %s767_s26  ;;  %p773_p2 = scmp.lt.s32.totalorder %s767_s26, %s767_s26 }
   0x8   :  { %p774_p3 = por %p773_p2, %p772_p1 }
   0xa   :  { %p775_p4 = pnand %p774_p3, %p768_p0 }
   0xc   :  { %778 = shalt.err (!%p775_p4)
}
   0xd   :  { %s868_s27 = smov 128   ;;  %s869_s28 = smov 8  }
   0xe   :  { %37 = dma.hbm_to_vmem [thread:$0]  %s942_s1, 256, %s32_s25, [#allocation6], %s868_s27, %s868_s27, %s869_s28  }
   0xf   :  { %s870_s8 = smov [#allocation2]   ;;  %s871_s10 = smov [#allocation7]  }
  0x10   :  { %s22_s9 = sshll.u32 %s870_s8, 4  ;;  %s45_s11 = sshll.u32 %s871_s10, 4  ;;  %s23_s9 = int_to_ptr.vmem [resolvable:$true] %s22_s9  ;;  %s46_s11 = int_to_ptr.vmem [resolvable:$true] %s45_s11 }
  0x11   :  { %s787_s12 = scalar_lea.vmem %s23_s9, 128  ;;  %p792_p6 = scmp.lt.s32.totalorder %s23_s9, %s23_s9 }
  0x12   :  { %p788_p5 = scmp.ne.s32.totalorder %s23_s9, %s787_s12  ;;  %p793_p7 = scmp.lt.s32.totalorder %s787_s12, %s787_s12 }
  0x14   :  { %p794_p8 = por %p793_p7, %p792_p6 }
  0x16   :  { %p795_p9 = pnand %p794_p8, %p788_p5 }
  0x18   :  { %798 = shalt.err (!%p795_p9)
}
  0x19   :  { %25 = dma.hbm_to_vmem [thread:$0]  %s941_s0, 128, %s23_s9, [#allocation3]  }
  0x1a   :  { %s807_s15 = scalar_lea.vmem %s46_s11, 4096  ;;  %p812_p11 = scmp.lt.s32.totalorder %s46_s11, %s46_s11 }
  0x1b   :  { %p808_p10 = scmp.ne.s32.totalorder %s46_s11, %s807_s15  ;;  %p813_p12 = scmp.lt.s32.totalorder %s807_s15, %s807_s15 }
  0x1d   :  { %p814_p13 = por %p813_p12, %p812_p11 }
  0x1f   :  { %p815_p0 = pnand %p814_p13, %p808_p10 }
  0x21   :  { %818 = shalt.err (!%p815_p0)
}
  0x22   :  { %51 = dma.hbm_to_vmem [thread:$0]  %s944_s3, 4096, %s46_s11, [#allocation6], %s868_s27, %s868_s27, %s869_s28  }
  0x23   :  { %s872_s17 = smov [#allocation8]  }
  0x24   :  { %s59_s18 = sshll.u32 %s872_s17, 4  ;;  %s60_s18 = int_to_ptr.vmem [resolvable:$true] %s59_s18 }
  0x25   :  { %s827_s19 = scalar_lea.vmem %s60_s18, 2048  ;;  %p832_p2 = scmp.lt.s32.totalorder %s60_s18, %s60_s18 }
  0x26   :  { %p828_p1 = scmp.ne.s32.totalorder %s60_s18, %s827_s19  ;;  %p833_p3 = scmp.lt.s32.totalorder %s827_s19, %s827_s19 }
  0x28   :  { %p834_p4 = por %p833_p3, %p832_p2 }
  0x2a   :  { %p835_p5 = pnand %p834_p4, %p828_p1 }
  0x2c   :  { %838 = shalt.err (!%p835_p5)
}
  0x2d   :  { %s873_s0 = smov 64   ;;  %s874_s20 = smov 4  }
  0x2e   :  { %65 = dma.hbm_to_vmem [thread:$0]  %s946_s5, 2048, %s60_s18, [#allocation9], %s873_s0, %s873_s0, %s874_s20  }
  0x2f   :  { %859 = dma.done.wait [#allocation3], 128  }
  0x30   :  { %860 = vsyncadd [#allocation3], 4294967168 }
  0x31   :  { %861 = dma.done.wait [#allocation6], 4352  }
  0x32   :  { %862 = vsyncadd [#allocation6], 4294962944 }
  0x33   :  { %863 = dma.done.wait [#allocation9], 2048  }
  0x34   :  { %864 = vsyncadd [#allocation9], 4294965248  ;;  %v875_v0 = vmov 0   ;;  %v690_v1 = vld [vmem:[#allocation5 + $0x4] ss:$8 sps:$4 sm:$0xff]   ;;  %v81_v3 = vld [vmem:[#allocation2] sm:$0xff]  ;;  %v87_v49 = vlaneseq }
  0x35   :  { %143 = vmatprep.mubr.bf16.mxu0 %v875_v0  ;;  %v692_v2 = vld [vmem:[#allocation5] ss:$8 sps:$4 sm:$0xff]   ;;  %125 = vmatprep.subr.bf16.mxu0 %v690_v1  ;;  %v82_v4 = vpack.c.bf16 %v81_v3, %v81_v3  ;;  %v693_v5 = vld [vmem:[#allocation7 + $0x74] ss:$8 sps:$4 sm:$0xff]   ;;  %vm107_vm0 = vcmask 130048   ;;  %v745_v41 = vld [vmem:[#allocation8 + $0x68] sm:$0xff]  }
  0x36   :  { %v695_v6 = vld [vmem:[#allocation7 + $0x70] ss:$8 sps:$4 sm:$0xff]   ;;  %126 = vmatpush1.bf16.msra.mxu0 %v692_v2  ;;  %v696_v7 = vld [vmem:[#allocation7 + $0x64] ss:$8 sps:$4 sm:$0xff]   ;;  %360 = vmatprep.subr.bf16.mxu1 %v693_v5  ;;  %v698_v8 = vld [vmem:[#allocation7 + $0x60] ss:$8 sps:$4 sm:$0xff]  }
  0x37   :  { %361 = vmatpush1.bf16.msra.mxu1 %v695_v6  ;;  %v699_v9 = vld [vmem:[#allocation7 + $0x54] ss:$8 sps:$4 sm:$0xff]   ;;  %v701_v10 = vld [vmem:[#allocation7 + $0x50] ss:$8 sps:$4 sm:$0xff]   ;;  %v702_v11 = vld [vmem:[#allocation7 + $0x44] ss:$8 sps:$4 sm:$0xff]  }
  0x38   :  { %362 = vmatprep.subr.bf16.mxu1 %v696_v7  ;;  %v704_v12 = vld [vmem:[#allocation7 + $0x40] ss:$8 sps:$4 sm:$0xff]   ;;  %v705_v13 = vld [vmem:[#allocation7 + $0x34] ss:$8 sps:$4 sm:$0xff]   ;;  %v707_v14 = vld [vmem:[#allocation7 + $0x30] ss:$8 sps:$4 sm:$0xff]  }
  0x39   :  { %608 = vmatmul.mubr.msk.bf16.vlgmr.msra.gmra.mxu0 %vm107_vm0, %v82_v4  ;;  %v708_v15 = vld [vmem:[#allocation7 + $0x24] ss:$8 sps:$4 sm:$0xff]   ;;  %v710_v16 = vld [vmem:[#allocation7 + $0x20] ss:$8 sps:$4 sm:$0xff]   ;;  %v711_v17 = vld [vmem:[#allocation7 + $0x14] ss:$8 sps:$4 sm:$0xff]  }
  0x3a   :  { %v713_v18 = vld [vmem:[#allocation7 + $0x10] ss:$8 sps:$4 sm:$0xff]   ;;  %v714_v19 = vld [vmem:[#allocation7 + $0x4] ss:$8 sps:$4 sm:$0xff]   ;;  %v716_v20 = vld [vmem:[#allocation7] ss:$8 sps:$4 sm:$0xff]  }
  0x3b   :  { %363 = vmatpush1.bf16.msra.mxu1 %v698_v8  ;;  %v717_v21 = vld [vmem:[#allocation7 + $0xf4] ss:$8 sps:$4 sm:$0xff]   ;;  %v719_v22 = vld [vmem:[#allocation7 + $0xf0] ss:$8 sps:$4 sm:$0xff]   ;;  %v720_v23 = vld [vmem:[#allocation7 + $0xe4] ss:$8 sps:$4 sm:$0xff]  }
  0x3c   :  { %364 = vmatprep.subr.bf16.mxu1 %v699_v9  ;;  %v722_v24 = vld [vmem:[#allocation7 + $0xe0] ss:$8 sps:$4 sm:$0xff]   ;;  %v723_v25 = vld [vmem:[#allocation7 + $0xd4] ss:$8 sps:$4 sm:$0xff]   ;;  %v725_v26 = vld [vmem:[#allocation7 + $0xd0] ss:$8 sps:$4 sm:$0xff]  }
  0x3d   :  { %v726_v27 = vld [vmem:[#allocation7 + $0xc4] ss:$8 sps:$4 sm:$0xff]   ;;  %v728_v28 = vld [vmem:[#allocation7 + $0xc0] ss:$8 sps:$4 sm:$0xff]   ;;  %v729_v29 = vld [vmem:[#allocation7 + $0xb4] ss:$8 sps:$4 sm:$0xff]  }
  0x3e   :  { %v731_v30 = vld [vmem:[#allocation7 + $0xb0] ss:$8 sps:$4 sm:$0xff]   ;;  %v732_v31 = vld [vmem:[#allocation7 + $0xa4] ss:$8 sps:$4 sm:$0xff]   ;;  %v734_v32 = vld [vmem:[#allocation7 + $0xa0] ss:$8 sps:$4 sm:$0xff]  }
  0x3f   :  { %365 = vmatpush1.bf16.msra.mxu1 %v701_v10  ;;  %v735_v33 = vld [vmem:[#allocation7 + $0x94] ss:$8 sps:$4 sm:$0xff]   ;;  %v737_v34 = vld [vmem:[#allocation7 + $0x90] ss:$8 sps:$4 sm:$0xff]   ;;  %v738_v35 = vld [vmem:[#allocation7 + $0x84] ss:$8 sps:$4 sm:$0xff]  }
  0x40   :  { %366 = vmatprep.subr.bf16.mxu1 %v702_v11  ;;  %v740_v36 = vld [vmem:[#allocation7 + $0x80] ss:$8 sps:$4 sm:$0xff]   ;;  %v741_v37 = vld [vmem:[#allocation8 + $0x78] sm:$0xff]   ;;  %v743_v39 = vld [vmem:[#allocation8 + $0x70] sm:$0xff]   ;;  %v88_v50 = vshrl.u32 %v87_v49, 7 }
  0x41   :  { %v742_v38 = vld [vmem:[#allocation8 + $0x38] sm:$0xff]   ;;  %658 = vmatprep.subr.bf16.mxu0 %v741_v37  ;;  %v744_v40 = vld [vmem:[#allocation8 + $0x30] sm:$0xff]   ;;  %v746_v42 = vld [vmem:[#allocation8 + $0x28] sm:$0xff]  }
  0x42   :  { %659 = vmatpush3.bf16.msra.mxu0 %v742_v38  ;;  %v747_v43 = vld [vmem:[#allocation8 + $0x60] sm:$0xff]   ;;  %v749_v45 = vld [vmem:[#allocation8 + $0x58] sm:$0xff]   ;;  %v751_v47 = vld [vmem:[#allocation8 + $0x50] sm:$0xff]   ;;  %v89_v51 = vsub.s32 0, %v88_v50  ;;  %v93_v53 = vsub.s32 1, %v88_v50 }
  0x43   :  { %367 = vmatpush1.bf16.msra.mxu1 %v704_v12  ;;  %660 = vmatprep.subr.bf16.mxu0 %v743_v39  ;;  %v748_v44 = vld [vmem:[#allocation8 + $0x20] sm:$0xff]   ;;  %v750_v46 = vld [vmem:[#allocation8 + $0x18] sm:$0xff]   ;;  %v752_v48 = vld [vmem:[#allocation8 + $0x10] sm:$0xff]  }
  0x44   :  { %368 = vmatprep.subr.bf16.mxu1 %v705_v13  ;;  %v85_v52 = vld [vmem:[%s943_s2] sm:$0x3]  ;;  %v755_v4 = vld [vmem:[#allocation8 + $0x40] sm:$0xff]  }
  0x45   :  { %v90_v54 = vrot.slane %v85_v52, %v89_v51  ;;  %v94_v55 = vrot.slane %v85_v52, %v93_v53  ;;  %v753_v2 = vld [vmem:[#allocation8 + $0x48] sm:$0xff]   ;;  %v756_v5 = vld [vmem:[#allocation8] sm:$0xff]  }
  0x46   :  { %661 = vmatpush3.bf16.msra.mxu0 %v744_v40  ;;  %v754_v3 = vld [vmem:[#allocation8 + $0x8] sm:$0xff]  }
  0x47   :  { %369 = vmatpush1.bf16.msra.mxu1 %v707_v14  ;;  %662 = vmatprep.subr.bf16.mxu0 %v745_v41  ;;  %v188_v6 = vld [vmem:[%s945_s4] sm:$0x3]  ;;  %s876_s4 = smov [#allocation10]  }
  0x48   :  { %370 = vmatprep.subr.bf16.mxu1 %v708_v15  ;;  %v193_v7 = vrot.slane %v188_v6, %v89_v51  ;;  %v197_v8 = vrot.slane %v188_v6, %v93_v53  ;;  %s595_s26 = sshll.u32 %s876_s4, 4  ;;  %s596_s26 = int_to_ptr.vmem [resolvable:$true] %s595_s26 }
  0x49   :  { %s839_s27 = scalar_lea.vmem %s596_s26, 128  ;;  %p844_p7 = scmp.lt.s32.totalorder %s596_s26, %s596_s26 }
  0x4a   :  { %663 = vmatpush3.bf16.msra.mxu0 %v746_v42  ;;  %p840_p6 = scmp.ne.s32.totalorder %s596_s26, %s839_s27  ;;  %p845_p8 = scmp.lt.s32.totalorder %s839_s27, %s839_s27 }
  0x4b   :  { %371 = vmatpush1.bf16.msra.mxu1 %v710_v16  ;;  %664 = vmatprep.subr.bf16.mxu0 %v747_v43 }
  0x4c   :  { %372 = vmatprep.subr.bf16.mxu1 %v711_v17  ;;  %p846_p9 = por %p845_p8, %p844_p7 }
  0x4e   :  { %665 = vmatpush3.bf16.msra.mxu0 %v748_v44  ;;  %p847_p10 = pnand %p846_p9, %p840_p6 }
  0x4f   :  { %373 = vmatpush1.bf16.msra.mxu1 %v713_v18  ;;  %666 = vmatprep.subr.bf16.mxu0 %v749_v45 }
  0x50   :  { %374 = vmatprep.subr.bf16.mxu1 %v714_v19 }
  0x52   :  { %667 = vmatpush3.bf16.msra.mxu0 %v750_v46 }
  0x53   :  { %375 = vmatpush1.bf16.msra.mxu1 %v716_v20  ;;  %668 = vmatprep.subr.bf16.mxu0 %v751_v47  ;;  %v641_v20 = vld [vmem:[%s947_s6] ss:$0 sm:$0xff] }
  0x54   :  { %376 = vmatprep.subr.bf16.mxu1 %v717_v21 }
  0x56   :  { %669 = vmatpush3.bf16.msra.mxu0 %v752_v48 }
  0x57   :  { %377 = vmatpush2.bf16.msra.mxu1 %v719_v22  ;;  %670 = vmatprep.subr.bf16.mxu0 %v753_v2 }
  0x58   :  { %378 = vmatprep.subr.bf16.mxu1 %v720_v23 }
  0x5a   :  { %671 = vmatpush3.bf16.msra.mxu0 %v754_v3 }
  0x5b   :  { %379 = vmatpush2.bf16.msra.mxu1 %v722_v24  ;;  %672 = vmatprep.subr.bf16.mxu0 %v755_v4 }
  0x5c   :  { %380 = vmatprep.subr.bf16.mxu1 %v723_v25 }
  0x5e   :  { %673 = vmatpush3.bf16.msra.mxu0 %v756_v5 }
  0x5f   :  { %381 = vmatpush2.bf16.msra.mxu1 %v725_v26 }
  0x60   :  { %382 = vmatprep.subr.bf16.mxu1 %v726_v27 }
  0x63   :  { %383 = vmatpush2.bf16.msra.mxu1 %v728_v28 }
  0x64   :  { %384 = vmatprep.subr.bf16.mxu1 %v729_v29  ;;  %v585_v29 = vand.u32 127, %v87_v49 }
  0x66   :  { %vm586_vm1 = vcmp.ge.s32.totalorder %v585_v29, 1 }
  0x67   :  { %385 = vmatpush2.bf16.msra.mxu1 %v731_v30 }
  0x68   :  { %386 = vmatprep.subr.bf16.mxu1 %v732_v31 }
  0x6b   :  { %387 = vmatpush2.bf16.msra.mxu1 %v734_v32 }
  0x6c   :  { %388 = vmatprep.subr.bf16.mxu1 %v735_v33 }
  0x6f   :  { %389 = vmatpush2.bf16.msra.mxu1 %v737_v34 }
  0x70   :  { %390 = vmatprep.subr.bf16.mxu1 %v738_v35 }
  0x73   :  { %391 = vmatpush2.bf16.msra.mxu1 %v740_v36 }
  0xf9   :  { %v145_v56 = vpop.f32.mrf.mxu0 }
  0xfa   :  { %v146_v57 = vadd.f32 %v145_v56, %v90_v54 }
  0xfb   :  { %v147_v58 = vpop.f32.mrf.mxu0 }
  0xfc   :  { %v148_v59 = vadd.f32 %v147_v58, %v94_v55  ;;  %v152_v60 = vmax.f32 %v146_v57, 0.0 }
  0xfd   :  { %v149_v61 = vpop.f32.mrf.mxu0 }
  0xfe   :  { %v153_v62 = vmax.f32 %v148_v59, 0.0  ;;  %v154_v1 = vpack.c.bf16 %v152_v60, %v152_v60 }
  0xff   :  { %v150_v63 = vpop.f32.mrf.mxu0 }
 0x100   :  { %v155_v0 = vpack.c.bf16 %v153_v62, %v153_v62 }
 0x102   :  { %392 = vmatprep.mubr.bf16.mxu1 %v155_v0 }
 0x103   :  { %393 = vmatmul.mubr.bf16.vlgmr.msra.gmra.mxu1 %v154_v1 }
 0x1c3   :  { %v394_v9 = vpop.f32.mrf.mxu1 }
 0x1c4   :  { %v395_v10 = vadd.f32 %v394_v9, %v193_v7 }
 0x1c5   :  { %v396_v11 = vpop.f32.mrf.mxu1 }
 0x1c6   :  { %v397_v12 = vadd.f32 %v396_v11, %v197_v8  ;;  %v401_v13 = vmax.f32 %v395_v10, 0.0 }
 0x1c7   :  { %v398_v14 = vpop.f32.mrf.mxu1 }
 0x1c8   :  { %v402_v15 = vmax.f32 %v397_v12, 0.0  ;;  %v403_v18 = vpack.c.bf16 %v401_v13, %v401_v13 }
 0x1c9   :  { %v399_v16 = vpop.f32.mrf.mxu1 }
 0x1ca   :  { %v404_v17 = vpack.c.bf16 %v402_v15, %v402_v15 }
 0x1cc   :  { %572 = vmatprep.mubr.bf16.mxu0 %v404_v17 }
 0x1cd   :  { %573 = vmatmul.mubr.bf16.vlgmr.msra.gmra.mxu0 %v403_v18 }
 0x28d   :  { %v674_v19 = vpop.f32.mrf.mxu0 }
 0x28f   :  { %v675_v21 = vpop.f32.mrf.mxu0 }
 0x290   :  { %v676_v22 = vadd.f32 %v675_v21, %v674_v19 }
 0x291   :  { %v677_v23 = vpop.f32.mrf.mxu0 }
 0x292   :  { %v575_v24 = vadd.f32 %v676_v22, %v641_v20 }
 0x293   :  { %v678_v25 = vpop.f32.mrf.mxu0 }
 0x294   :  { %v580_v26 = vmax.f32 %v575_v24, -20.0 }
 0x296   :  { %v581_v27 = vmin.f32 %v580_v26, 2.0 }
 0x298   :  { %v582_v28 = vmul.f32 1.442695, %v581_v27 }
 0x29a   :  { %757 = vpow2.f32 %v582_v28 }
 0x2a7   :  { %v758_v30 = vpop.eup %757 }
 0x2a8   :  { %v587_v31 = vsel %vm586_vm1, %v758_v30, %v575_v24 }
 0x2a9   :  { %588 = vst [vmem:[#allocation10] sm:$0xff] %v587_v31 }
 0x2aa   :  { %850 = shalt.err (!%p847_p10)
}
 0x2ab   :  { %598 = dma.vmem_to_hbm [thread:$0]  %s596_s26, 128, %s948_s7, [#allocation4]  }
 0x2ac   :  { %865 = dma.done.wait [#allocation4], 128  }
 0x2ad   :  { %866 = vsyncadd [#allocation4], 4294967168 }
 0x2ae   :  { %602 = vsyncpa [#allocation3], 1 }
 0x2af   :  { %603 = vsyncpa [#allocation6], 1 }
 0x2b0   :  { %604 = vsyncpa [#allocation9], 1 }
 0x2b1   :  { %605 = vsyncpa [#allocation4], 1 }

</bundles_post_ra>
